<compile_context>
chip_gen: v7x
topology: tpu7x:2x2x1
jax: 0.10.0
libtpu: 0.0.40
codegen_flags: <defaults>
</compile_context>

<pallas_src>
import math

import jax
import jax.numpy as jnp
from jax import lax
from jax.experimental import pallas as pl
from jax.experimental.pallas import tpu as pltpu

LANES = 128


def _round_up(x, m):
    return -(-x // m) * m


def _device_tuning():
    """(block byte budget for 2 inputs x 2 buffers, vmem_limit_bytes, n_cores)."""
    try:
        kind = jax.devices()[0].device_kind.lower()
    except Exception:
        kind = ""
    if "v7" in kind or "tpu7" in kind:
        # v7x: 64 MiB VMEM per TensorCore, 2 TCs per chip.
        return 40 * 1024 * 1024, 56 * 1024 * 1024, 2
    if "v6" in kind:
        # v6e: 128 MiB physical VMEM, 1 TC.
        return 64 * 1024 * 1024, 96 * 1024 * 1024, 1
    if "v5" in kind:
        # v5e / v5p: 128 MiB physical VMEM; raise the 16 MiB scoped default.
        return 48 * 1024 * 1024, 64 * 1024 * 1024, 1
    # Unknown / older chips: stay under the 16 MiB default scoped VMEM.
    return 12 * 1024 * 1024, None, 1


def _make_mse_kernel(T, SUB, cpp, valid_tiles):
    """Kernel over blocks of shape (1, T, LANES); valid_tiles row-tiles per row."""
    trip = T // SUB
    fast_unroll = min(8, trip)
    tail_unroll = min(2, trip)

    def kernel(o_ref, t_ref, out_ref, acc_ref):
        p = pl.program_id(0)            # partial ("parallel"; v7x megacore)
        b = pl.program_id(1)            # batch row ("arbitrary")
        j = pl.program_id(2)            # chunk within partial ("arbitrary")

        @pl.when((b == 0) & (j == 0))
        def _init():
            acc_ref[...] = jnp.zeros_like(acc_ref)

        c = p * cpp + j                 # flat chunk index
        rem = valid_tiles - c * T       # valid row-tiles left in this chunk

        def load_sq(i):
            base = pl.multiple_of(i * SUB, SUB)
            o = o_ref[0, pl.ds(base, SUB), :].astype(jnp.float32)
            t = t_ref[0, pl.ds(base, SUB), :].astype(jnp.float32)
            d = o - t
            return d * d

        # Fast path: every row-tile of this chunk is valid (all chunks except,
        # at most, the tail chunk of each partial).  Pure VPU, no masking.
        @pl.when(rem >= T)
        def _fast():
            def body(i, acc):
                return acc + load_sq(i)
            acc = lax.fori_loop(0, trip, body,
                                jnp.zeros((SUB, LANES), jnp.float32),
                                unroll=fast_unroll)
            acc_ref[...] += acc

        # Tail path: mask row-tiles >= rem against a scalar threshold.
        # (rem <= 0 for fully-padded overrun chunks from the partial split.)
        @pl.when(rem < T)
        def _tail():
            row_iota = lax.broadcasted_iota(jnp.int32, (SUB, LANES), 0)

            def body(i, acc):
                sq = load_sq(i)
                thresh = rem - i * SUB          # scalar threshold
                return acc + jnp.where(row_iota < thresh, sq, 0.0)

            acc = lax.fori_loop(0, trip, body,
                                jnp.zeros((SUB, LANES), jnp.float32),
                                unroll=tail_unroll)
            acc_ref[...] += acc

        # Single cross-lane/sublane reduce, once per partial.
        @pl.when((b == pl.num_programs(1) - 1) & (j == pl.num_programs(2) - 1))
        def _finish():
            out_ref[...] = jnp.broadcast_to(jnp.sum(acc_ref[...]),
                                            out_ref.shape)

    return kernel


@jax.jit
def moon_loss(outputs, targets):
    """MSE(outputs, targets[:, :outputs.shape[1]]) — mean over all elements."""
    B = outputs.shape[0]
    n_ch = outputs.shape[1]
    spatial = math.prod(outputs.shape[2:])
    n_cols = n_ch * spatial                     # valid columns per batch row
    t_cols = targets.shape[1] * spatial
    n_total = B * n_cols

    o_item = jnp.dtype(outputs.dtype).itemsize
    t_item = jnp.dtype(targets.dtype).itemsize

    if n_cols % LANES == 0 and t_cols % LANES == 0:
        # Fast path: free contiguous reshapes; targets[:, :n_ch] is the prefix
        # row-tiles of each t3d row, selected purely by the BlockSpec reads.
        o3d = outputs.reshape(B, n_cols // LANES, LANES)
        t3d = targets.reshape(B, t_cols // LANES, LANES)
        valid_tiles = n_cols // LANES
    else:
        # TODO(synk): uncommon fallback pays one extra HBM pass for the pad /
        # prefix-slice; zero padding contributes (0-0)^2 = 0 to the sum.
        pad = (-n_cols) % LANES
        o2d = jnp.pad(outputs.reshape(B, n_cols), ((0, 0), (0, pad)))
        t2d = jnp.pad(targets.reshape(B, t_cols)[:, :n_cols],
                      ((0, 0), (0, pad)))
        valid_tiles = (n_cols + pad) // LANES
        o3d = o2d.reshape(B, valid_tiles, LANES)
        t3d = t2d.reshape(B, valid_tiles, LANES)

    R_o = o3d.shape[1]                           # row-tiles in outputs operand

    # ---- static tiling choices --------------------------------------------
    budget, vmem_limit, n_cores = _device_tuning()
    itemsize = max(o_item, t_item)

    # Row-tiles per block: 2 inputs x 2 pipeline buffers of (1, T, 128).
    T_cap = max(8, (budget // (4 * LANES * itemsize)) // 8 * 8)
    T = min(T_cap, _round_up(R_o, 8))
    SUB = 64 if T >= 64 else T                   # sub-slab rows for inner loop
    T = max(SUB, (T // SUB) * SUB)

    total_chunks = -(-R_o // T)
    n_partial = max(1, min(n_cores, total_chunks))   # 2 only on v7x
    cpp = -(-total_chunks // n_partial)               # chunks per partial

    def in_map(p, b, j):
        # Clamp so over-run grid steps re-read a valid chunk (fully masked to 0).
        return (b, jnp.minimum(p * cpp + j, total_chunks - 1), 0)

    kernel = _make_mse_kernel(T, SUB, cpp, valid_tiles)

    compiler_kwargs = dict(
        dimension_semantics=("parallel", "arbitrary", "arbitrary"))
    if vmem_limit is not None:
        compiler_kwargs["vmem_limit_bytes"] = vmem_limit

    partials = pl.pallas_call(
        kernel,
        out_shape=jax.ShapeDtypeStruct((n_partial * 8, LANES), jnp.float32),
        grid_spec=pltpu.PrefetchScalarGridSpec(
            num_scalar_prefetch=0,
            grid=(n_partial, B, cpp),
            in_specs=[
                pl.BlockSpec((1, T, LANES), in_map),
                pl.BlockSpec((1, T, LANES), in_map),
            ],
            out_specs=pl.BlockSpec((8, LANES), lambda p, b, j: (p, 0)),
            scratch_shapes=[pltpu.VMEM((SUB, LANES), jnp.float32)],
        ),
        compiler_params=pltpu.CompilerParams(**compiler_kwargs),
        cost_estimate=pl.CostEstimate(
            flops=3 * n_total,
            transcendentals=0,
            bytes_accessed=n_total * (o_item + t_item)
            + n_partial * 8 * LANES * 4,
        ),
    )(o3d, t3d)

    sq_sum = jnp.sum(partials.reshape(n_partial, 8, LANES)[:, 0, 0])
    return (sq_sum / jnp.float32(n_total)).astype(jnp.float32)


if __name__ == "__main__":
    key = jax.random.PRNGKey(0)
    k1, k2 = jax.random.split(key)

    B, H, W = 2, 16, 16
    C_out, C_tgt = 3, 4     # targets carry an extra channel; forward uses [:, :3]

    outputs = jax.random.normal(k1, (B, C_out, H, W), dtype=jnp.float32)
    targets = jax.random.normal(k2, (B, C_tgt, H, W), dtype=jnp.float32)

    loss = moon_loss(outputs, targets)
    jax.block_until_ready(loss)

    # Reference check (plain JAX).
    ref = jnp.mean((outputs - targets[:, :3]) ** 2)
    assert jnp.allclose(loss, ref, rtol=1e-5, atol=1e-5), (loss, ref)

    print("KERNEL_OK")
</pallas_src>

<mosaic_0001>
module attributes {stable_mosaic.version = 11 : i64} {
  func.func @kernel(%arg0: i32, %arg1: i32, %arg2: i32, %arg3: memref<1x8x128xf32, #tpu.memory_space<vmem>>, %arg4: memref<1x8x128xf32, #tpu.memory_space<vmem>>, %arg5: memref<8x128xf32, #tpu.memory_space<vmem>>, %arg6: memref<8x128xf32, #tpu.memory_space<vmem>>) attributes {dimension_semantics = [#tpu.dimension_semantics<parallel>, #tpu.dimension_semantics<arbitrary>, #tpu.dimension_semantics<arbitrary>], iteration_bounds = array<i64: 1, 2, 1>, scalar_prefetch = 0 : i64, scratch_operands = 1 : i64, tpu.core_type = #tpu.core_type<tc>, window_params = [{transform_indices = @transform_0, window_bounds = array<i64: 1, 8, 128>}, {transform_indices = @transform_1, window_bounds = array<i64: 1, 8, 128>}, {transform_indices = @transform_2, window_bounds = array<i64: 8, 128>}]} {
    %c0_i32 = arith.constant 0 : i32
    %0 = arith.cmpi eq, %arg1, %c0_i32 : i32
    %c0_i32_0 = arith.constant 0 : i32
    %1 = arith.cmpi eq, %arg2, %c0_i32_0 : i32
    %2 = arith.andi %0, %1 : i1
    %3 = arith.extui %2 : i1 to i32
    %c0_i32_1 = arith.constant 0 : i32
    %4 = arith.cmpi ne, %3, %c0_i32_1 : i32
    scf.if %4 {
      %cst = arith.constant 0.000000e+00 : f32
      %20 = vector.broadcast %cst : f32 to vector<8x128xf32>
      %c0 = arith.constant 0 : index
      %c0_9 = arith.constant 0 : index
      %21 = vector.load %arg6[%c0, %c0_9] : memref<8x128xf32, #tpu.memory_space<vmem>>, vector<8x128xf32>
      tpu.vector_store %arg6[%c0, %c0_9], %20 {strides = array<i32>} : memref<8x128xf32, #tpu.memory_space<vmem>>, vector<8x128xf32>,
    } else {
    }
    %c1_i32 = arith.constant 1 : i32
    %5 = arith.muli %arg0, %c1_i32 : i32
    %6 = arith.addi %5, %arg2 : i32
    %c8_i32 = arith.constant 8 : i32
    %7 = arith.muli %6, %c8_i32 : i32
    %c6_i32 = arith.constant 6 : i32
    %8 = arith.subi %c6_i32, %7 : i32
    %c8_i32_2 = arith.constant 8 : i32
    %9 = arith.cmpi sge, %8, %c8_i32_2 : i32
    %10 = arith.extui %9 : i1 to i32
    %c0_i32_3 = arith.constant 0 : i32
    %11 = arith.cmpi ne, %10, %c0_i32_3 : i32
    scf.if %11 {
      %cst = arith.constant 0.000000e+00 : f32
      %20 = vector.broadcast %cst : f32 to vector<8x128xf32>
      %c0_i32_9 = arith.constant 0 : i32
      %c8_i32_10 = arith.constant 8 : i32
      %21 = arith.muli %c0_i32_9, %c8_i32_10 : i32
      %22 = tpu.assume_multiple %21, 8 : i32
      %c0 = arith.constant 0 : index
      %23 = arith.index_cast %22 : i32 to index
      %c0_11 = arith.constant 0 : index
      %24 = vector.load %arg3[%c0, %23, %c0_11] : memref<1x8x128xf32, #tpu.memory_space<vmem>>, vector<1x8x128xf32>
      %25 = vector.shape_cast %24 : vector<1x8x128xf32> to vector<8x128xf32>
      %c0_12 = arith.constant 0 : index
      %26 = arith.index_cast %22 : i32 to index
      %c0_13 = arith.constant 0 : index
      %27 = vector.load %arg4[%c0_12, %26, %c0_13] : memref<1x8x128xf32, #tpu.memory_space<vmem>>, vector<1x8x128xf32>
      %28 = vector.shape_cast %27 : vector<1x8x128xf32> to vector<8x128xf32>
      %29 = arith.subf %25, %28 : vector<8x128xf32>
      %30 = arith.mulf %29, %29 : vector<8x128xf32>
      %31 = arith.addf %20, %30 : vector<8x128xf32>
      %c1_i32_14 = arith.constant 1 : i32
      %c0_15 = arith.constant 0 : index
      %c0_16 = arith.constant 0 : index
      %32 = vector.load %arg6[%c0_15, %c0_16] : memref<8x128xf32, #tpu.memory_space<vmem>>, vector<8x128xf32>
      %33 = arith.addf %32, %31 : vector<8x128xf32>
      %c0_17 = arith.constant 0 : index
      %c0_18 = arith.constant 0 : index
      %34 = vector.load %arg6[%c0_17, %c0_18] : memref<8x128xf32, #tpu.memory_space<vmem>>, vector<8x128xf32>
      tpu.vector_store %arg6[%c0_17, %c0_18], %33 {strides = array<i32>} : memref<8x128xf32, #tpu.memory_space<vmem>>, vector<8x128xf32>,
    } else {
    }
    %c8_i32_4 = arith.constant 8 : i32
    %12 = arith.cmpi slt, %8, %c8_i32_4 : i32
    %13 = arith.extui %12 : i1 to i32
    %c0_i32_5 = arith.constant 0 : i32
    %14 = arith.cmpi ne, %13, %c0_i32_5 : i32
    scf.if %14 {
      %20 = tpu.iota {dimensions = array<i32: 0>} : vector<8x128xi32>
      %cst = arith.constant 0.000000e+00 : f32
      %21 = vector.broadcast %cst : f32 to vector<8x128xf32>
      %c0_i32_9 = arith.constant 0 : i32
      %c8_i32_10 = arith.constant 8 : i32
      %22 = arith.muli %c0_i32_9, %c8_i32_10 : i32
      %23 = tpu.assume_multiple %22, 8 : i32
      %c0 = arith.constant 0 : index
      %24 = arith.index_cast %23 : i32 to index
      %c0_11 = arith.constant 0 : index
      %25 = vector.load %arg3[%c0, %24, %c0_11] : memref<1x8x128xf32, #tpu.memory_space<vmem>>, vector<1x8x128xf32>
      %26 = vector.shape_cast %25 : vector<1x8x128xf32> to vector<8x128xf32>
      %c0_12 = arith.constant 0 : index
      %27 = arith.index_cast %23 : i32 to index
      %c0_13 = arith.constant 0 : index
      %28 = vector.load %arg4[%c0_12, %27, %c0_13] : memref<1x8x128xf32, #tpu.memory_space<vmem>>, vector<1x8x128xf32>
      %29 = vector.shape_cast %28 : vector<1x8x128xf32> to vector<8x128xf32>
      %30 = arith.subf %26, %29 : vector<8x128xf32>
      %31 = arith.mulf %30, %30 : vector<8x128xf32>
      %c8_i32_14 = arith.constant 8 : i32
      %32 = arith.muli %c0_i32_9, %c8_i32_14 : i32
      %33 = arith.subi %8, %32 : i32
      %34 = vector.broadcast %33 : i32 to vector<8x128xi32>
      %35 = arith.cmpi slt, %20, %34 : vector<8x128xi32>
      %cst_15 = arith.constant 0.000000e+00 : f32
      %36 = vector.broadcast %cst_15 : f32 to vector<8x128xf32>
      %37 = arith.select %35, %31, %36 : vector<8x128xi1>, vector<8x128xf32>
      %38 = arith.addf %21, %37 : vector<8x128xf32>
      %c1_i32_16 = arith.constant 1 : i32
      %c0_17 = arith.constant 0 : index
      %c0_18 = arith.constant 0 : index
      %39 = vector.load %arg6[%c0_17, %c0_18] : memref<8x128xf32, #tpu.memory_space<vmem>>, vector<8x128xf32>
      %40 = arith.addf %39, %38 : vector<8x128xf32>
      %c0_19 = arith.constant 0 : index
      %c0_20 = arith.constant 0 : index
      %41 = vector.load %arg6[%c0_19, %c0_20] : memref<8x128xf32, #tpu.memory_space<vmem>>, vector<8x128xf32>
      tpu.vector_store %arg6[%c0_19, %c0_20], %40 {strides = array<i32>} : memref<8x128xf32, #tpu.memory_space<vmem>>, vector<8x128xf32>,
    } else {
    }
    %c1_i32_6 = arith.constant 1 : i32
    %15 = arith.cmpi eq, %arg1, %c1_i32_6 : i32
    %c0_i32_7 = arith.constant 0 : i32
    %16 = arith.cmpi eq, %arg2, %c0_i32_7 : i32
    %17 = arith.andi %15, %16 : i1
    %18 = arith.extui %17 : i1 to i32
    %c0_i32_8 = arith.constant 0 : i32
    %19 = arith.cmpi ne, %18, %c0_i32_8 : i32
    scf.if %19 {
      %c0 = arith.constant 0 : index
      %c0_9 = arith.constant 0 : index
      %20 = vector.load %arg6[%c0, %c0_9] : memref<8x128xf32, #tpu.memory_space<vmem>>, vector<8x128xf32>
      %21 = vector.shape_cast %20 : vector<8x128xf32> to vector<1x8x128xf32>
      %cst = arith.constant dense<0.000000e+00> : vector<1xf32>
      %22 = vector.multi_reduction <add>, %21, %cst [1, 2] : vector<1x8x128xf32> to vector<1xf32>
      %23 = vector.shape_cast %22 : vector<1xf32> to vector<1x1x1xf32>
      %24 = vector.extract %23[0, 0, 0] : f32 from vector<1x1x1xf32>
      %25 = vector.broadcast %24 : f32 to vector<8x128xf32>
      %c0_10 = arith.constant 0 : index
      %c0_11 = arith.constant 0 : index
      %26 = vector.load %arg5[%c0_10, %c0_11] : memref<8x128xf32, #tpu.memory_space<vmem>>, vector<8x128xf32>
      tpu.vector_store %arg5[%c0_10, %c0_11], %25 {strides = array<i32>} : memref<8x128xf32, #tpu.memory_space<vmem>>, vector<8x128xf32>,
    } else {
    }
    return
  }
  func.func @transform_0(%arg0: i32, %arg1: i32, %arg2: i32) -> (i32, i32, i32) {
    %c1_i32 = arith.constant 1 : i32
    %0 = arith.muli %arg0, %c1_i32 : i32
    %1 = arith.addi %0, %arg2 : i32
    %c0_i32 = arith.constant 0 : i32
    %2 = arith.minsi %1, %c0_i32 : i32
    %c0_i32_0 = arith.constant 0 : i32
    %c0_i32_1 = arith.constant 0 : i32
    return %arg1, %2, %c0_i32_0 : i32, i32, i32
  }
  func.func @transform_1(%arg0: i32, %arg1: i32, %arg2: i32) -> (i32, i32, i32) {
    %c1_i32 = arith.constant 1 : i32
    %0 = arith.muli %arg0, %c1_i32 : i32
    %1 = arith.addi %0, %arg2 : i32
    %c0_i32 = arith.constant 0 : i32
    %2 = arith.minsi %1, %c0_i32 : i32
    %c0_i32_0 = arith.constant 0 : i32
    %c0_i32_1 = arith.constant 0 : i32
    return %arg1, %2, %c0_i32_0 : i32, i32, i32
  }
  func.func @transform_2(%arg0: i32, %arg1: i32, %arg2: i32) -> (i32, i32) {
    %c0_i32 = arith.constant 0 : i32
    %c0_i32_0 = arith.constant 0 : i32
    return %arg0, %c0_i32 : i32, i32
  }
}

</mosaic_0001>

<bundles_post_ra>
// kernel: moon_loss.1
= control target key start
LH: loop header
LB: loop body
LE: loop exit
PB: predicated region body
PF: predicated region fallthrough
CT: control target
= control target key end

     0   :  { %s455_s9 = smov 0   ;;  %s457_s10 = smov 0   ;;  %s497_s0 = inlined_call_operand.vmem [shape: f32[2,6,128], index: 0, kind: input, shape index: {}]   ;;  %s498_s1 = inlined_call_operand.vmem [shape: f32[2,8,128], index: 1, kind: input, shape index: {}]   ;;  %s499_s2 = inlined_call_operand.vmem [shape: f32[8,128], index: 2, kind: output, shape index: {}]  }
   0x1   :  { %s459_s11 = smov 0  }
   0x2 LB: > { %s27_s12 = sadd.s32 1, %s433_s10  ;;  %p378_p0 = scmp.ge.s32.totalorder %s437_s11, 1  ;;  %s437_s11 = sphi %s459_s11, %s12_s11   ;;  %s433_s10 = sphi %s457_s10, %s501_s10   ;;  %s429_s9 = sphi %s455_s9, %s500_s9  }
   0x3   : > { %p29_p1 = scmp.ge.s32.totalorder %s27_s12, 2  ;;  %p173_p2 = scmp.lt.s32.totalorder %s437_s11, 3 }
   0x5   : > { %s503_s12 = smov (%p29_p1, %s27_s12), 0  ;;  %p174_p3 = pnand %p378_p0, %p173_p2 }
   0x6   : > { %p212_p4 = scmp.lt.s32.totalorder (!%p174_p3), %s429_s9, 1  ;;  %p239_p5 = scmp.eq.s32.totalorder (!%p174_p3), %s429_s9, 0 }
   0x7   : > { %177 = sbr.rel (%p174_p3) target bundleno = 245 (0xf5), region = 28 }
   0xe   : > { %s213_s13 = scalar_select %p212_p4, %s429_s9, 1 }
   0xf   : > { %244 = sbr.rel (!%p239_p5) target bundleno = 22 (0x16), region = 32  ;;  %v439_v0 = vmov (%p239_p5), 0.0  }
  0x10   : > { %s379_s14 = sshll.u32 %s213_s13, 3  ;;  %245 = vst [vmem:[#allocation2] sm:$0xff] (%p239_p5), %v439_v0 }
  0x11   : > { %s218_s17 = scalar_lea.vmem %s497_s0, %s379_s14  ;;  %s231_s20 = scalar_lea.vmem %s498_s1, %s379_s14 }
  0x16 PF: > { %v265_v1 = vlaneseq  ;;  %v267_v2 = vld [vmem:[%s218_s17] sm:$0xff]  ;;  %p278_p6 = scmp.eq.s32.totalorder %s429_s9, 1 }
  0x17   : > { %v268_v3 = vld [vmem:[%s231_s20] sm:$0xff] }
  0x18   : > { %v269_v4 = vsub.f32 %v267_v2, %v268_v3  ;;  %v266_v5 = vshrl.u32 %v265_v1, 7  ;;  %v275_v7 = vld [vmem:[#allocation2] sm:$0xff] }
  0x19   : > { %282 = sbr.rel (!%p278_p6) target bundleno = 245 (0xf5), region = 44 }
  0x1a   : > { %v270_v6 = vmul.f32 %v269_v4, %v269_v4  ;;  %vm272_vm0 = vcmp.lt.s32.totalorder %v266_v5, 6 }
  0x1c   : > { %v273_v8 = vsel %vm272_vm0, %v270_v6, 0.0 }
  0x1d   : > { %v276_v9 = vadd.f32 %v275_v7, %v273_v8 }
  0x1f   : > { %277 = vst [vmem:[#allocation2] sm:$0xff] %v276_v9 }
  0x26   : > { %v283_v10 = vld [vmem:[#allocation2] sm:$0xff] }
  0x27   : > { %284 = vadd.xlane.f32.xlu0 %v283_v10 }
  0xb4   : > { %v285_v11 = vpop.xlane.xlu0 %284 }
  0xb5   : > { %v286_v12 = vrot.slane %v285_v11, 4 }
  0xb7   : > { %v287_v13 = vadd.f32 %v286_v12, %v285_v11 }
  0xb9   : > { %v288_v14 = vrot.slane %v287_v13, 2 }
  0xbb   : > { %v289_v15 = vadd.f32 %v288_v14, %v287_v13 }
  0xbd   : > { %v290_v16 = vrot.slane %v289_v15, 1 }
  0xbf   : > { %v291_v17 = vadd.f32 %v290_v16, %v289_v15 }
  0xc1   : > { %388 = vpush %v291_v17 }
  0xf2   : > { %s389_s21 = spop %388 }
  0xf3   : > { %v293_v18 = vstv %s389_s21 }
  0xf4   : > { %294 = vst [vmem:[%s499_s2] sm:$0xff] %v293_v18 }
  0xf5 PF: > { %s12_s11 = sadd.s32 1, %s437_s11   ;;  %s500_s9 = smov %s433_s10 }
  0xf6   : > { %p9_p7 = scmp.ge.s32.totalorder %s12_s11, 4   ;;  %s501_s10 = smov %s503_s12 }
  0xf8   :  { %11 = sbr.rel (!%p9_p7) target bundleno = 2 (0x2), region = 77 }

</bundles_post_ra>
